<compile_context>
chip_gen: v6e
topology: v6e:2x2x1
jax: 0.10.0
libtpu: 0.0.40
codegen_flags: <defaults>
</compile_context>

<pallas_src>
import jax
import jax.numpy as jnp
from jax.experimental import pallas as pl
from jax.experimental.pallas import tpu as pltpu

_LANE = 128


def _round_up(a, b):
    return ((a + b - 1) // b) * b


def mlp_kernel(x_ref, w1_ref, b1_ref, w2_ref, b2_ref, w3_ref, b3_ref, o_ref):
    # ---- Layer 1: (TN, 2) x (2, Dp) done on the VPU (K=2 is a waste of MXU).
    x = x_ref[...]                       # (TN, 2) f32
    w1 = w1_ref[...]                     # (2, Dp) f32
    h1 = x[:, 0:1] * w1[0:1, :] + x[:, 1:2] * w1[1:2, :] + b1_ref[...]
    h1 = jnp.maximum(h1, 0.0)            # (TN, Dp) f32; padded lanes == 0

    # ---- Layer 2: the dominant matmul -> MXU, operands in w2's dtype
    # (bf16 on v6e/v7x), f32 accumulation; bias add + ReLU stay in f32.
    h2 = jnp.dot(h1.astype(w2_ref.dtype), w2_ref[...],
                 preferred_element_type=jnp.float32)
    h2 = jnp.maximum(h2 + b2_ref[...], 0.0)

    # ---- Layer 3: lane-dense (Dp, 128) weight so the output store is a full
    # unmasked (TN, 128) writeback; real logits live in lanes 0..1.
    out = jnp.dot(h2.astype(w3_ref.dtype), w3_ref[...],
                  preferred_element_type=jnp.float32) + b3_ref[...]
    o_ref[...] = out.astype(o_ref.dtype)


def mlp_classifier(x, params, *, tile_n=256, compute_dtype=jnp.bfloat16):
    """x: (N, 2) float32. params: PyTorch-convention weights (W is (out, in))."""
    n, fin = x.shape
    assert fin == 2
    d_model = params["w1"].shape[0]
    d_pad = _round_up(d_model, _LANE)     # pad hidden dim to full MXU/vreg lanes
    out_pad = _LANE                       # lane-dense output block

    # Torch (out, in) -> (in, out); zero-pad to lane-aligned widths.
    # Zero padding is numerically inert: ReLU(0)=0 keeps padded lanes at 0.
    w1 = jnp.zeros((2, d_pad), jnp.float32).at[:, :d_model].set(params["w1"].T)
    b1 = jnp.zeros((1, d_pad), jnp.float32).at[:, :d_model].set(params["b1"][None, :])
    w2 = jnp.zeros((d_pad, d_pad), jnp.float32).at[:d_model, :d_model].set(params["w2"].T)
    b2 = jnp.zeros((1, d_pad), jnp.float32).at[:, :d_model].set(params["b2"][None, :])
    w3 = jnp.zeros((d_pad, out_pad), jnp.float32).at[:d_model, :2].set(params["w3"].T)
    b3 = jnp.zeros((1, out_pad), jnp.float32).at[:, :2].set(params["b3"][None, :])

    # MXU operand dtype (bf16 halves w2's VMEM/HBM footprint; accumulation f32).
    w2 = w2.astype(compute_dtype)
    w3 = w3.astype(compute_dtype)

    # Batch tiling: pad N to a multiple of the tile so every block is full.
    tn = _round_up(max(8, min(tile_n, _round_up(n, 8))), 8)
    n_pad = _round_up(n, tn)
    x_p = jnp.zeros((n_pad, 2), jnp.float32).at[:n, :].set(x.astype(jnp.float32))

    grid = (n_pad // tn,)
    resident = lambda shape: pl.BlockSpec(shape, lambda i: (0, 0))  # stays in VMEM

    out = pl.pallas_call(
        mlp_kernel,
        out_shape=jax.ShapeDtypeStruct((n_pad, out_pad), jnp.float32),
        grid=grid,
        in_specs=[
            pl.BlockSpec((tn, 2), lambda i: (i, 0)),   # x: tiled over batch
            resident((2, d_pad)),                      # w1
            resident((1, d_pad)),                      # b1
            resident((d_pad, d_pad)),                  # w2
            resident((1, d_pad)),                      # b2
            resident((d_pad, out_pad)),                # w3 (lane-dense)
            resident((1, out_pad)),                    # b3
        ],
        out_specs=pl.BlockSpec((tn, out_pad), lambda i: (i, 0)),
        compiler_params=pltpu.CompilerParams(
            dimension_semantics=("parallel",)),        # megacore shard on v7x
    )(x_p, w1, b1, w2, b2, w3, b3)

    return out[:n, :2]


def init_params(key, d_model):
    """Deterministic init, PyTorch nn.Linear convention: W is (out, in)."""
    k1, k2, k3, k4, k5, k6 = jax.random.split(key, 6)
    scale = 0.1
    return {
        "w1": scale * jax.random.normal(k1, (d_model, 2), jnp.float32),
        "b1": scale * jax.random.normal(k2, (d_model,), jnp.float32),
        "w2": scale * jax.random.normal(k3, (d_model, d_model), jnp.float32),
        "b2": scale * jax.random.normal(k4, (d_model,), jnp.float32),
        "w3": scale * jax.random.normal(k5, (2, d_model), jnp.float32),
        "b3": scale * jax.random.normal(k6, (2,), jnp.float32),
    }


def mlp_reference(x, p):
    h1 = jnp.maximum(x @ p["w1"].T + p["b1"], 0.0)
    h2 = jnp.maximum(h1 @ p["w2"].T + p["b2"], 0.0)
    return h2 @ p["w3"].T + p["b3"]


if __name__ == "__main__":
    key = jax.random.PRNGKey(0)
    kx, kp, kx2 = jax.random.split(key, 3)

    d_model = 32
    params = init_params(kp, d_model)

    # Small-shape check (single grid step), f32 MXU operands -> tight tolerance.
    batch = 8
    x = jax.random.normal(kx, (batch, 2), jnp.float32)
    out_f32 = jax.block_until_ready(
        mlp_classifier(x, params, compute_dtype=jnp.float32))
    ref = mlp_reference(x, params)
    assert out_f32.shape == (batch, 2), out_f32.shape
    assert jnp.allclose(out_f32, ref, atol=1e-5, rtol=1e-5), "f32 mismatch vs reference"

    # bf16 MXU-operand path on the same small batch (looser tolerance).
    out_bf16 = jax.block_until_ready(mlp_classifier(x, params))
    assert jnp.allclose(out_bf16, ref, atol=5e-3, rtol=5e-2), "bf16 mismatch vs reference"

    # Multi-tile grid check (batch padded/tiled, grid > 1), f32 tight tolerance.
    batch2 = 500  # deliberately not a multiple of the tile
    x2 = jax.random.normal(kx2, (batch2, 2), jnp.float32)
    out2 = jax.block_until_ready(
        mlp_classifier(x2, params, tile_n=128, compute_dtype=jnp.float32))
    ref2 = mlp_reference(x2, params)
    assert out2.shape == (batch2, 2), out2.shape
    assert jnp.allclose(out2, ref2, atol=1e-5, rtol=1e-5), "tiled mismatch vs reference"

    print("KERNEL_OK")
</pallas_src>

<mosaic_0001>
module attributes {stable_mosaic.version = 11 : i64} {
  func.func @mlp_kernel(%arg0: i32, %arg1: memref<8x2xf32, #tpu.memory_space<vmem>>, %arg2: memref<2x128xf32, #tpu.memory_space<vmem>>, %arg3: memref<1x128xf32, #tpu.memory_space<vmem>>, %arg4: memref<128x128xf32, #tpu.memory_space<vmem>>, %arg5: memref<1x128xf32, #tpu.memory_space<vmem>>, %arg6: memref<128x128xf32, #tpu.memory_space<vmem>>, %arg7: memref<1x128xf32, #tpu.memory_space<vmem>>, %arg8: memref<8x128xf32, #tpu.memory_space<vmem>>) attributes {dimension_semantics = [#tpu.dimension_semantics<parallel>], iteration_bounds = array<i64: 1>, scalar_prefetch = 0 : i64, scratch_operands = 0 : i64, tpu.core_type = #tpu.core_type<tc>, window_params = [{transform_indices = @transform_0, window_bounds = array<i64: 8, 2>}, {pipeline_mode = #tpu.pipeline_mode<synchronous>, transform_indices = @transform_1, window_bounds = array<i64: 2, 128>}, {pipeline_mode = #tpu.pipeline_mode<synchronous>, transform_indices = @transform_2, window_bounds = array<i64: 1, 128>}, {pipeline_mode = #tpu.pipeline_mode<synchronous>, transform_indices = @transform_3, window_bounds = array<i64: 128, 128>}, {pipeline_mode = #tpu.pipeline_mode<synchronous>, transform_indices = @transform_4, window_bounds = array<i64: 1, 128>}, {pipeline_mode = #tpu.pipeline_mode<synchronous>, transform_indices = @transform_5, window_bounds = array<i64: 128, 128>}, {pipeline_mode = #tpu.pipeline_mode<synchronous>, transform_indices = @transform_6, window_bounds = array<i64: 1, 128>}, {transform_indices = @transform_7, window_bounds = array<i64: 8, 128>}]} {
    %c0 = arith.constant 0 : index
    %c0_0 = arith.constant 0 : index
    %0 = vector.load %arg1[%c0, %c0_0] : memref<8x2xf32, #tpu.memory_space<vmem>>, vector<8x2xf32>
    %c0_1 = arith.constant 0 : index
    %c0_2 = arith.constant 0 : index
    %1 = vector.load %arg2[%c0_1, %c0_2] : memref<2x128xf32, #tpu.memory_space<vmem>>, vector<2x128xf32>
    %2 = vector.extract_strided_slice %0 {offsets = [0, 0], sizes = [8, 1], strides = [1, 1]} : vector<8x2xf32> to vector<8x1xf32>
    %3 = vector.extract_strided_slice %1 {offsets = [0, 0], sizes = [1, 128], strides = [1, 1]} : vector<2x128xf32> to vector<1x128xf32>
    %4 = vector.broadcast %2 : vector<8x1xf32> to vector<8x128xf32>
    %5 = vector.broadcast %3 : vector<1x128xf32> to vector<8x128xf32>
    %6 = arith.mulf %4, %5 : vector<8x128xf32>
    %7 = vector.extract_strided_slice %0 {offsets = [0, 1], sizes = [8, 1], strides = [1, 1]} : vector<8x2xf32> to vector<8x1xf32>
    %8 = vector.extract_strided_slice %1 {offsets = [1, 0], sizes = [1, 128], strides = [1, 1]} : vector<2x128xf32> to vector<1x128xf32>
    %9 = vector.broadcast %7 : vector<8x1xf32> to vector<8x128xf32>
    %10 = vector.broadcast %8 : vector<1x128xf32> to vector<8x128xf32>
    %11 = arith.mulf %9, %10 : vector<8x128xf32>
    %12 = arith.addf %6, %11 : vector<8x128xf32>
    %c0_3 = arith.constant 0 : index
    %c0_4 = arith.constant 0 : index
    %13 = vector.load %arg3[%c0_3, %c0_4] : memref<1x128xf32, #tpu.memory_space<vmem>>, vector<1x128xf32>
    %14 = vector.broadcast %13 : vector<1x128xf32> to vector<8x128xf32>
    %15 = arith.addf %12, %14 : vector<8x128xf32>
    %cst = arith.constant 0.000000e+00 : f32
    %16 = vector.broadcast %cst : f32 to vector<8x128xf32>
    %17 = arith.maximumf %15, %16 : vector<8x128xf32>
    %c0_5 = arith.constant 0 : index
    %c0_6 = arith.constant 0 : index
    %18 = vector.load %arg4[%c0_5, %c0_6] : memref<128x128xf32, #tpu.memory_space<vmem>>, vector<128x128xf32>
    %cst_7 = arith.constant dense<0.000000e+00> : vector<8x128xf32>
    %19 = tpu.matmul %17, %18, %cst_7 {dimension_numbers = #tpu.dot_dimension_numbers<[1], [0], [0], [1], [0, 0, 1, 1], [], []>} : vector<8x128xf32>, vector<128x128xf32>, vector<8x128xf32> -> vector<8x128xf32>
    %c0_8 = arith.constant 0 : index
    %c0_9 = arith.constant 0 : index
    %20 = vector.load %arg5[%c0_8, %c0_9] : memref<1x128xf32, #tpu.memory_space<vmem>>, vector<1x128xf32>
    %21 = vector.broadcast %20 : vector<1x128xf32> to vector<8x128xf32>
    %22 = arith.addf %19, %21 : vector<8x128xf32>
    %cst_10 = arith.constant 0.000000e+00 : f32
    %23 = vector.broadcast %cst_10 : f32 to vector<8x128xf32>
    %24 = arith.maximumf %22, %23 : vector<8x128xf32>
    %c0_11 = arith.constant 0 : index
    %c0_12 = arith.constant 0 : index
    %25 = vector.load %arg6[%c0_11, %c0_12] : memref<128x128xf32, #tpu.memory_space<vmem>>, vector<128x128xf32>
    %cst_13 = arith.constant dense<0.000000e+00> : vector<8x128xf32>
    %26 = tpu.matmul %24, %25, %cst_13 {dimension_numbers = #tpu.dot_dimension_numbers<[1], [0], [0], [1], [0, 0, 1, 1], [], []>} : vector<8x128xf32>, vector<128x128xf32>, vector<8x128xf32> -> vector<8x128xf32>
    %c0_14 = arith.constant 0 : index
    %c0_15 = arith.constant 0 : index
    %27 = vector.load %arg7[%c0_14, %c0_15] : memref<1x128xf32, #tpu.memory_space<vmem>>, vector<1x128xf32>
    %28 = vector.broadcast %27 : vector<1x128xf32> to vector<8x128xf32>
    %29 = arith.addf %26, %28 : vector<8x128xf32>
    %c0_16 = arith.constant 0 : index
    %c0_17 = arith.constant 0 : index
    %30 = vector.load %arg8[%c0_16, %c0_17] : memref<8x128xf32, #tpu.memory_space<vmem>>, vector<8x128xf32>
    tpu.vector_store %arg8[%c0_16, %c0_17], %29 {strides = array<i32>} : memref<8x128xf32, #tpu.memory_space<vmem>>, vector<8x128xf32>,
    return
  }
  func.func @transform_0(%arg0: i32) -> (i32, i32) {
    %c0_i32 = arith.constant 0 : i32
    %c0_i32_0 = arith.constant 0 : i32
    return %arg0, %c0_i32 : i32, i32
  }
  func.func @transform_1(%arg0: i32) -> (i32, i32) {
    %c0_i32 = arith.constant 0 : i32
    %c0_i32_0 = arith.constant 0 : i32
    %c0_i32_1 = arith.constant 0 : i32
    return %c0_i32, %c0_i32_0 : i32, i32
  }
  func.func @transform_2(%arg0: i32) -> (i32, i32) {
    %c0_i32 = arith.constant 0 : i32
    %c0_i32_0 = arith.constant 0 : i32
    %c0_i32_1 = arith.constant 0 : i32
    return %c0_i32, %c0_i32_0 : i32, i32
  }
  func.func @transform_3(%arg0: i32) -> (i32, i32) {
    %c0_i32 = arith.constant 0 : i32
    %c0_i32_0 = arith.constant 0 : i32
    %c0_i32_1 = arith.constant 0 : i32
    return %c0_i32, %c0_i32_0 : i32, i32
  }
  func.func @transform_4(%arg0: i32) -> (i32, i32) {
    %c0_i32 = arith.constant 0 : i32
    %c0_i32_0 = arith.constant 0 : i32
    %c0_i32_1 = arith.constant 0 : i32
    return %c0_i32, %c0_i32_0 : i32, i32
  }
  func.func @transform_5(%arg0: i32) -> (i32, i32) {
    %c0_i32 = arith.constant 0 : i32
    %c0_i32_0 = arith.constant 0 : i32
    %c0_i32_1 = arith.constant 0 : i32
    return %c0_i32, %c0_i32_0 : i32, i32
  }
  func.func @transform_6(%arg0: i32) -> (i32, i32) {
    %c0_i32 = arith.constant 0 : i32
    %c0_i32_0 = arith.constant 0 : i32
    %c0_i32_1 = arith.constant 0 : i32
    return %c0_i32, %c0_i32_0 : i32, i32
  }
  func.func @transform_7(%arg0: i32) -> (i32, i32) {
    %c0_i32 = arith.constant 0 : i32
    %c0_i32_0 = arith.constant 0 : i32
    return %arg0, %c0_i32 : i32, i32
  }
}

</mosaic_0001>

<bundles_post_ra>
// kernel: tpu_custom_call.1
= control target key start
LH: loop header
LB: loop body
LE: loop exit
PB: predicated region body
PF: predicated region fallthrough
CT: control target
= control target key end

     0   :  { %12 = vsyncpa [#allocation3], 0  ;;  %s581_s0 = inlined_call_operand.vmem [shape: f32[8,2], index: 0, kind: input, shape index: {}]   ;;  %s582_s1 = inlined_call_operand.vmem [shape: f32[2,128], index: 1, kind: input, shape index: {}]   ;;  %s583_s2 = inlined_call_operand.vmem [shape: f32[1,128], index: 2, kind: input, shape index: {}]   ;;  %s584_s3 = inlined_call_operand.hbm [shape: f32[128,128], index: 3, kind: input, shape index: {}]   ;;  %s585_s4 = inlined_call_operand.vmem [shape: f32[1,128], index: 4, kind: input, shape index: {}]   ;;  %s586_s5 = inlined_call_operand.hbm [shape: f32[128,128], index: 5, kind: input, shape index: {}]   ;;  %s587_s6 = inlined_call_operand.vmem [shape: f32[1,128], index: 6, kind: input, shape index: {}]   ;;  %s588_s7 = inlined_call_operand.hbm [shape: f32[8,128], index: 7, kind: output, shape index: {}]  }
   0x1   :  { %13 = vsyncpa [#allocation6], 0 }
   0x2   :  { %14 = vsyncpa [#allocation4], 0  ;;  %s474_s24 = smov [#allocation2]  }
   0x3   :  { %s26_s25 = sshll.u32 %s474_s24, 4  ;;  %s27_s25 = int_to_ptr.vmem [resolvable:$true] %s26_s25 }
   0x4   :  { %s416_s26 = scalar_lea.vmem %s27_s25, 2048  ;;  %p421_p1 = scmp.lt.s32.totalorder %s27_s25, %s27_s25 }
   0x5   :  { %p417_p0 = scmp.ne.s32.totalorder %s27_s25, %s416_s26  ;;  %p422_p2 = scmp.lt.s32.totalorder %s416_s26, %s416_s26 }
   0x7   :  { %p423_p3 = por %p422_p2, %p421_p1 }
   0x9   :  { %p424_p4 = pnand %p423_p3, %p417_p0 }
   0xb   :  { %427 = shalt.err (!%p424_p4)
}
   0xc   :  { %s475_s27 = smov 128   ;;  %s476_s28 = smov 8  }
   0xd   :  { %32 = dma.hbm_to_vmem [thread:$0]  %s584_s3, 2048, %s27_s25, [#allocation3], %s475_s27, %s475_s27, %s476_s28  }
   0xe   :  { %s477_s8 = smov [#allocation5]  }
   0xf   :  { %s40_s9 = sshll.u32 %s477_s8, 4  ;;  %s41_s9 = int_to_ptr.vmem [resolvable:$true] %s40_s9 }
  0x10   :  { %s436_s10 = scalar_lea.vmem %s41_s9, 2048  ;;  %p441_p6 = scmp.lt.s32.totalorder %s41_s9, %s41_s9 }
  0x11   :  { %p437_p5 = scmp.ne.s32.totalorder %s41_s9, %s436_s10  ;;  %p442_p7 = scmp.lt.s32.totalorder %s436_s10, %s436_s10 }
  0x13   :  { %p443_p8 = por %p442_p7, %p441_p6 }
  0x15   :  { %p444_p9 = pnand %p443_p8, %p437_p5 }
  0x17   :  { %447 = shalt.err (!%p444_p9)
}
  0x18   :  { %46 = dma.hbm_to_vmem [thread:$0]  %s586_s5, 2048, %s41_s9, [#allocation6], %s475_s27, %s475_s27, %s476_s28  }
  0x19   :  { %468 = dma.done.wait [#allocation3], 2048  }
  0x1a   :  { %469 = vsyncadd [#allocation3], 4294965248 }
  0x1b   :  { %470 = dma.done.wait [#allocation6], 2048  }
  0x1c   :  { %471 = vsyncadd [#allocation6], 4294965248  ;;  %v478_v0 = vmov 0   ;;  %v479_v1 = vmov 0.0   ;;  %v55_v2 = vld [vmem:[%s581_s0] sm:$0xff]  ;;  %v101_v3 = vld [vmem:[#allocation2 + $0x78] sm:$0xff]  ;;  %v62_v33 = vlaneseq }
  0x1d   :  { %406 = vset.pattern.permute.xlu0 %v478_v0  ;;  %327 = vmatprep.subr.mxu0 %v479_v1  ;;  %v100_v4 = vld [vmem:[#allocation2 + $0x70] sm:$0xff]  ;;  %v99_v5 = vld [vmem:[#allocation2 + $0x68] sm:$0xff]  ;;  %v98_v6 = vld [vmem:[#allocation2 + $0x60] sm:$0xff]  ;;  %v480_v7 = vmov 1   ;;  %vm481_vm0 = vmmov 0   ;;  %s482_s18 = smov [#allocation7]  }
  0x1e   :  { %362 = vmatprep.subr.mxu1 %v479_v1  ;;  %59 = vperm.xlu0 %406, %v55_v2   ;;  %v97_v8 = vld [vmem:[#allocation2 + $0x58] sm:$0xff]  ;;  %v96_v9 = vld [vmem:[#allocation2 + $0x50] sm:$0xff]  ;;  %v95_v10 = vld [vmem:[#allocation2 + $0x48] sm:$0xff]  ;;  %v63_v34 = vshrl.u32 %v62_v33, 7  ;;  %s280_s19 = sshll.u32 %s482_s18, 4  ;;  %s281_s19 = int_to_ptr.vmem [resolvable:$true] %s280_s19 }
  0x1f   :  { %328 = vmatpush3.msra.mxu0 %v101_v3  ;;  %359 = vmatprep.mubr.msk.f32.mxu0 %vm481_vm0, %v479_v1  ;;  %v195_v11 = vld [vmem:[#allocation5 + $0x78] sm:$0xff]  ;;  %v194_v12 = vld [vmem:[#allocation5 + $0x70] sm:$0xff]  ;;  %v94_v13 = vld [vmem:[#allocation2 + $0x40] sm:$0xff]  ;;  %s448_s20 = scalar_lea.vmem %s281_s19, 128  ;;  %p453_p11 = scmp.lt.s32.totalorder %s281_s19, %s281_s19 }
  0x20   :  { %329 = vmatprep.subr.mxu0 %v479_v1  ;;  %394 = vmatprep.mubr.msk.f32.mxu1 %vm481_vm0, %v479_v1  ;;  %v193_v14 = vld [vmem:[#allocation5 + $0x68] sm:$0xff]  ;;  %v93_v15 = vld [vmem:[#allocation2 + $0x38] sm:$0xff]  ;;  %v192_v16 = vld [vmem:[#allocation5 + $0x60] sm:$0xff]  ;;  %v64_v35 = vsub.s32 0, %v63_v34  ;;  %v73_v36 = vsub.s32 1, %v63_v34  ;;  %p449_p10 = scmp.ne.s32.totalorder %s281_s19, %s448_s20  ;;  %p454_p12 = scmp.lt.s32.totalorder %s448_s20, %s448_s20 }
  0x21   :  { %330 = vmatpush3.msra.mxu0 %v100_v4  ;;  %363 = vmatpush3.msra.mxu1 %v195_v11  ;;  %v92_v17 = vld [vmem:[#allocation2 + $0x30] sm:$0xff]  ;;  %v191_v18 = vld [vmem:[#allocation5 + $0x58] sm:$0xff]  ;;  %v91_v19 = vld [vmem:[#allocation2 + $0x28] sm:$0xff] }
  0x22   :  { %331 = vmatprep.subr.mxu0 %v479_v1  ;;  %407 = vset.pattern.permute.xlu0 %v480_v7  ;;  %v190_v20 = vld [vmem:[#allocation5 + $0x50] sm:$0xff]  ;;  %v90_v21 = vld [vmem:[#allocation2 + $0x20] sm:$0xff]  ;;  %v189_v22 = vld [vmem:[#allocation5 + $0x48] sm:$0xff]  ;;  %p455_p13 = por %p454_p12, %p453_p11 }
  0x23   :  { %332 = vmatpush3.msra.mxu0 %v99_v5  ;;  %68 = vperm.xlu0 %407, %v55_v2   ;;  %v89_v23 = vld [vmem:[#allocation2 + $0x18] sm:$0xff]  ;;  %v188_v24 = vld [vmem:[#allocation5 + $0x40] sm:$0xff]  ;;  %v88_v25 = vld [vmem:[#allocation2 + $0x10] sm:$0xff] }
  0x24   :  { %333 = vmatprep.subr.mxu0 %v479_v1  ;;  %364 = vmatprep.subr.mxu1 %v479_v1  ;;  %v187_v26 = vld [vmem:[#allocation5 + $0x38] sm:$0xff]  ;;  %v87_v27 = vld [vmem:[#allocation2 + $0x8] sm:$0xff]  ;;  %v186_v28 = vld [vmem:[#allocation5 + $0x30] sm:$0xff]  ;;  %p456_p0 = pnand %p455_p13, %p449_p10 }
  0x25   :  { %334 = vmatpush3.msra.mxu0 %v98_v6  ;;  %365 = vmatpush3.msra.mxu1 %v194_v12  ;;  %v86_v29 = vld [vmem:[#allocation2] sm:$0xff]  ;;  %v185_v30 = vld [vmem:[#allocation5 + $0x28] sm:$0xff]  ;;  %v183_v32 = vld [vmem:[#allocation5 + $0x18] sm:$0xff] }
  0x26   :  { %335 = vmatprep.subr.mxu0 %v479_v1  ;;  %366 = vmatprep.subr.mxu1 %v479_v1  ;;  %v184_v31 = vld [vmem:[#allocation5 + $0x20] sm:$0xff]  ;;  %v182_v48 = vld [vmem:[#allocation5 + $0x10] sm:$0xff]  ;;  %v181_v49 = vld [vmem:[#allocation5 + $0x8] sm:$0xff] }
  0x27   :  { %336 = vmatpush3.msra.mxu0 %v97_v8  ;;  %367 = vmatpush3.msra.mxu1 %v193_v14  ;;  %v56_v37 = vld [vmem:[%s582_s1] sm:$0x3] }
  0x28   :  { %337 = vmatprep.subr.mxu0 %v479_v1  ;;  %368 = vmatprep.subr.mxu1 %v479_v1  ;;  %v65_v39 = vrot.slane %v56_v37, %v64_v35  ;;  %v74_v40 = vrot.slane %v56_v37, %v73_v36  ;;  %v290_v44 = vld [vmem:[%s583_s2] ss:$0 sm:$0xff] }
  0x29   :  { %338 = vmatpush3.msra.mxu0 %v96_v9  ;;  %369 = vmatpush3.msra.mxu1 %v192_v16  ;;  %v180_v50 = vld [vmem:[#allocation5] sm:$0xff] }
  0x2a   :  { %339 = vmatprep.subr.mxu0 %v479_v1  ;;  %370 = vmatprep.subr.mxu1 %v479_v1  ;;  %v291_v51 = vld [vmem:[%s585_s4] ss:$0 sm:$0xff] }
  0x2b   :  { %340 = vmatpush3.msra.mxu0 %v95_v10  ;;  %371 = vmatpush3.msra.mxu1 %v191_v18  ;;  %v292_v56 = vld [vmem:[%s587_s6] ss:$0 sm:$0xff] }
  0x2c   :  { %341 = vmatprep.subr.mxu0 %v479_v1  ;;  %372 = vmatprep.subr.mxu1 %v479_v1 }
  0x2d   :  { %342 = vmatpush3.msra.mxu0 %v94_v13  ;;  %373 = vmatpush3.msra.mxu1 %v190_v20 }
  0x2e   :  { %343 = vmatprep.subr.mxu0 %v479_v1  ;;  %374 = vmatprep.subr.mxu1 %v479_v1 }
  0x2f   :  { %344 = vmatpush3.msra.mxu0 %v93_v15  ;;  %375 = vmatpush3.msra.mxu1 %v189_v22 }
  0x30   :  { %345 = vmatprep.subr.mxu0 %v479_v1  ;;  %376 = vmatprep.subr.mxu1 %v479_v1 }
  0x31   :  { %346 = vmatpush3.msra.mxu0 %v92_v17  ;;  %377 = vmatpush3.msra.mxu1 %v188_v24 }
  0x32   :  { %347 = vmatprep.subr.mxu0 %v479_v1  ;;  %378 = vmatprep.subr.mxu1 %v479_v1 }
  0x33   :  { %348 = vmatpush3.msra.mxu0 %v91_v19  ;;  %379 = vmatpush3.msra.mxu1 %v187_v26 }
  0x34   :  { %349 = vmatprep.subr.mxu0 %v479_v1  ;;  %380 = vmatprep.subr.mxu1 %v479_v1 }
  0x35   :  { %350 = vmatpush3.msra.mxu0 %v90_v21  ;;  %381 = vmatpush3.msra.mxu1 %v186_v28 }
  0x36   :  { %351 = vmatprep.subr.mxu0 %v479_v1  ;;  %382 = vmatprep.subr.mxu1 %v479_v1 }
  0x37   :  { %352 = vmatpush3.msra.mxu0 %v89_v23  ;;  %383 = vmatpush3.msra.mxu1 %v185_v30 }
  0x38   :  { %353 = vmatprep.subr.mxu0 %v479_v1  ;;  %384 = vmatprep.subr.mxu1 %v479_v1 }
  0x39   :  { %354 = vmatpush3.msra.mxu0 %v88_v25  ;;  %385 = vmatpush3.msra.mxu1 %v184_v31 }
  0x3a   :  { %355 = vmatprep.subr.mxu0 %v479_v1  ;;  %386 = vmatprep.subr.mxu1 %v479_v1 }
  0x3b   :  { %356 = vmatpush3.msra.mxu0 %v87_v27  ;;  %387 = vmatpush3.msra.mxu1 %v183_v32 }
  0x3c   :  { %357 = vmatprep.subr.mxu0 %v479_v1  ;;  %388 = vmatprep.subr.mxu1 %v479_v1 }
  0x3d   :  { %358 = vmatpush3.msra.mxu0 %v86_v29  ;;  %389 = vmatpush3.msra.mxu1 %v182_v48 }
  0x3e   :  { %390 = vmatprep.subr.mxu1 %v479_v1 }
  0x3f   :  { %391 = vmatpush3.msra.mxu1 %v181_v49 }
  0x40   :  { %392 = vmatprep.subr.mxu1 %v479_v1 }
  0x41   :  { %393 = vmatpush3.msra.mxu1 %v180_v50 }
  0x99   :  { %v60_v38 = vpop.permute.xlu0 %59 }
  0x9a   :  { %v66_v42 = vmul.f32 %v65_v39, %v60_v38 }
  0x9e   :  { %v69_v41 = vpop.permute.xlu0 %68 }
  0x9f   :  { %v75_v43 = vmul.f32 %v74_v40, %v69_v41 }
  0xa1   :  { %v76_v45 = vadd.f32 %v75_v43, %v66_v42 }
  0xa3   :  { %v84_v46 = vadd.f32 %v290_v44, %v76_v45 }
  0xa5   :  { %v85_v47 = vmax.f32 %v84_v46, 0.0 }
  0xa7   :  { %360 = vmatmul.mubr.f32.vlgmr.msra.gmra.mxu0 %v85_v47 }
 0x167   :  { %v175_v52 = vpop.f32.mrf.mxu0 }
 0x168   :  { %v176_v53 = vadd.f32 %v291_v51, %v175_v52 }
 0x169   :  { %v361_v54 = vpop.f32.mrf.mxu0 }
 0x16a   :  { %v179_v55 = vmax.f32 %v176_v53, 0.0 }
 0x16c   :  { %395 = vmatmul.mubr.f32.vlgmr.msra.gmra.mxu1 %v179_v55 }
 0x22c   :  { %v269_v57 = vpop.f32.mrf.mxu1 }
 0x22d   :  { %v270_v58 = vadd.f32 %v292_v56, %v269_v57 }
 0x22e   :  { %v396_v59 = vpop.f32.mrf.mxu1 }
 0x22f   :  { %273 = vst [vmem:[#allocation7] sm:$0xff] %v270_v58 }
 0x230   :  { %459 = shalt.err (!%p456_p0)
}
 0x231   :  { %283 = dma.vmem_to_hbm [thread:$0]  %s281_s19, 128, %s588_s7, [#allocation4]  }
 0x232   :  { %472 = dma.done.wait [#allocation4], 128  }
 0x233   :  { %473 = vsyncadd [#allocation4], 4294967168 }
 0x234   :  { %287 = vsyncpa [#allocation3], 1 }
 0x235   :  { %288 = vsyncpa [#allocation6], 1 }
 0x236   :  { %289 = vsyncpa [#allocation4], 1 }

</bundles_post_ra>
